<compile_context>
chip_gen: v7x
topology: tpu7x:2x2x1
jax: 0.10.0
libtpu: 0.0.40
codegen_flags: <defaults>
</compile_context>

<pallas_src>
import functools

import jax
import jax.numpy as jnp
from jax import lax
from jax.experimental import pallas as pl
from jax.experimental.pallas import tpu as pltpu

ROWS, COLS = 2, 3  # fixed by the module's constant tensor


def add_const_kernel(x_ref, o_ref):
    # Build [[1,2,3],[4,5,6]] in-register instead of DMA'ing it from HBM:
    #   const[r, c] = r * COLS + c + 1
    r = lax.broadcasted_iota(jnp.int32, (ROWS, COLS), 0)
    c = lax.broadcasted_iota(jnp.int32, (ROWS, COLS), 1)
    const = (r * COLS + c + 1).astype(jnp.float32)
    o_ref[...] = x_ref[...] + const


@functools.partial(jax.jit, donate_argnums=(0,))
def torch_tensor_forward(x: jax.Array) -> jax.Array:
    """Replicates TorchTensor.forward: x + [[1,2,3],[4,5,6]] (float32, (2,3)).

    The input buffer is donated and aliased to the output (in-place update).
    """
    assert x.shape == (ROWS, COLS), "module semantics: x must be (2, 3)"
    x = x.astype(jnp.float32)

    return pl.pallas_call(
        add_const_kernel,
        out_shape=jax.ShapeDtypeStruct((ROWS, COLS), jnp.float32),
        # Whole (tiny) array resident in VMEM; no grid, no pipelining.
        # Block shape == full array shape, so the (8,128) tiling rule is moot.
        in_specs=[pl.BlockSpec(memory_space=pltpu.MemorySpace.VMEM)],
        out_specs=pl.BlockSpec(memory_space=pltpu.MemorySpace.VMEM),
        # Output reuses the input HBM buffer (write in place).
        input_output_aliases={0: 0},
    )(x)


if __name__ == "__main__":
    # Deterministic non-trivial input (the original script uses torch.ones((2,3))).
    key = jax.random.PRNGKey(0)
    x = jax.random.normal(key, (ROWS, COLS), dtype=jnp.float32)

    const = jnp.array([[1.0, 2.0, 3.0], [4.0, 5.0, 6.0]], dtype=jnp.float32)
    expected = x + const            # plain-XLA reference
    jax.block_until_ready(expected)  # computed before x's buffer is donated

    y = torch_tensor_forward(x)      # x is donated; output aliases its buffer
    jax.block_until_ready(y)

    assert y.shape == (ROWS, COLS) and y.dtype == jnp.float32
    assert bool(jnp.allclose(y, expected)), f"mismatch: {y} vs {expected}"

    # Also check the module's literal input (ones) on a fresh buffer.
    y_ones = torch_tensor_forward(jnp.ones((ROWS, COLS), dtype=jnp.float32))
    jax.block_until_ready(y_ones)
    assert bool(jnp.allclose(y_ones, const + 1.0)), f"mismatch: {y_ones}"

    print("KERNEL_OK")
</pallas_src>

<mosaic_0001>
module attributes {stable_mosaic.version = 11 : i64} {
  func.func @add_const_kernel(%arg0: memref<2x3xf32, #tpu.memory_space<vmem>>, %arg1: memref<2x3xf32, #tpu.memory_space<vmem>>) attributes {dimension_semantics = [], scalar_prefetch = 0 : i64, scratch_operands = 0 : i64, tpu.core_type = #tpu.core_type<tc>} {
    %0 = tpu.iota {dimensions = array<i32: 0>} : vector<2x3xi32>
    %1 = tpu.iota {dimensions = array<i32: 1>} : vector<2x3xi32>
    %c3_i32 = arith.constant 3 : i32
    %2 = vector.broadcast %c3_i32 : i32 to vector<2x3xi32>
    %3 = arith.muli %0, %2 : vector<2x3xi32>
    %4 = arith.addi %3, %1 : vector<2x3xi32>
    %c1_i32 = arith.constant 1 : i32
    %5 = vector.broadcast %c1_i32 : i32 to vector<2x3xi32>
    %6 = arith.addi %4, %5 : vector<2x3xi32>
    %7 = arith.sitofp %6 : vector<2x3xi32> to vector<2x3xf32>
    %c0 = arith.constant 0 : index
    %c0_0 = arith.constant 0 : index
    %8 = vector.load %arg0[%c0, %c0_0] : memref<2x3xf32, #tpu.memory_space<vmem>>, vector<2x3xf32>
    %9 = arith.addf %8, %7 : vector<2x3xf32>
    %c0_1 = arith.constant 0 : index
    %c0_2 = arith.constant 0 : index
    %10 = vector.load %arg1[%c0_1, %c0_2] : memref<2x3xf32, #tpu.memory_space<vmem>>, vector<2x3xf32>
    tpu.vector_store %arg1[%c0_1, %c0_2], %9 {strides = array<i32>} : memref<2x3xf32, #tpu.memory_space<vmem>>, vector<2x3xf32>,
    return
  }
}

</mosaic_0001>

<bundles_post_ra>
// kernel: torch_tensor_forward.1
= control target key start
LH: loop header
LB: loop body
LE: loop exit
PB: predicated region body
PF: predicated region fallthrough
CT: control target
= control target key end

     0   :  { %6 = vsyncpa [#allocation3], 0  ;;  %s134_s0 = inlined_call_operand.hbm [shape: f32[2,3], index: 0, kind: input, shape index: {}, may-alias: {0,1}]   ;;  %s135_s1 = inlined_call_operand.hbm [shape: f32[2,3], index: 1, kind: output, shape index: {}, may-alias: {0,1}]  }
   0x1   :  { %7 = vsyncpa [#allocation4], 0  ;;  %s98_s6 = smov [#allocation2]   ;;  %s50_s10 = scalar_lea.hbm %s134_s0, 32 }
   0x2   :  { %s14_s7 = sshll.u32 %s98_s6, 4  ;;  %p51_p0 = scmp.ne.s32.totalorder %s134_s0, %s50_s10  ;;  %s15_s7 = int_to_ptr.vmem [resolvable:$true] %s14_s7 }
   0x3   :  { %p54_p1 = scmp.lt.u32.totalorder %s50_s10, %s134_s0 }
   0x5   :  { %p56_p2 = pnand %p54_p1, %p51_p0 }
   0x7   :  { %59 = shalt.err (!%p56_p2)
}
   0x8   :  { %s60_s15 = scalar_lea.vmem %s15_s7, 32  ;;  %p65_p4 = scmp.lt.s32.totalorder %s15_s7, %s15_s7 }
   0x9   :  { %p61_p3 = scmp.ne.s32.totalorder %s15_s7, %s60_s15  ;;  %p66_p5 = scmp.lt.s32.totalorder %s60_s15, %s60_s15 }
   0xb   :  { %p67_p6 = por %p66_p5, %p65_p4 }
   0xd   :  { %p68_p7 = pnand %p67_p6, %p61_p3 }
   0xf   :  { %71 = shalt.err (!%p68_p7)
}
  0x10   :  { %17 = dma.hbm_to_vmem [thread:$0]  %s134_s0, 32, %s15_s7, [#allocation3]  }
  0x11   :  { %94 = dma.done.wait [#allocation3], 32  }
  0x12   :  { %95 = vsyncadd [#allocation3], 4294967264  ;;  %v21_v0 = vlaneseq  ;;  %v29_v6 = vld [vmem:[#allocation2] sm:$0x3]  ;;  %s99_s18 = smov [#allocation5]   ;;  %vm31_vm0 = vcmask 17408  }
  0x13   :  { %s39_s19 = sshll.u32 %s99_s18, 4  ;;  %s40_s19 = int_to_ptr.vmem [resolvable:$true] %s39_s19 }
  0x14   :  { %v22_v1 = vshrl.u32 %v21_v0, 7  ;;  %v24_v2 = vand.u32 127, %v21_v0  ;;  %s72_s20 = scalar_lea.vmem %s40_s19, 32  ;;  %p77_p9 = scmp.lt.s32.totalorder %s40_s19, %s40_s19 }
  0x15   :  { %p73_p8 = scmp.ne.s32.totalorder %s40_s19, %s72_s20  ;;  %p78_p10 = scmp.lt.s32.totalorder %s72_s20, %s72_s20 }
  0x16   :  { %v25_v3 = vmul.u32 3, %v22_v1 }
  0x17   :  { %p79_p11 = por %p78_p10, %p77_p9 }
  0x18   :  { %v26_v4 = vadd.s32 %v25_v3, %v24_v2 }
  0x19   :  { %p80_p12 = pnand %p79_p11, %p73_p8 }
  0x1a   :  { %v27_v5 = vadd.s32 1, %v26_v4 }
  0x1c   :  { %v28_v7 = vcvt.s32.f32 %v27_v5 }
  0x1e   :  { %v30_v8 = vadd.f32 %v29_v6, %v28_v7 }
  0x20   :  { %32 = vst.msk [vmem:[#allocation5] sm:$0x3] %vm31_vm0, %v30_v8 }
  0x21   :  { %83 = shalt.err (!%p80_p12)
}
  0x22   :  { %s84_s22 = scalar_lea.hbm %s135_s1, 32 }
  0x23   :  { %p85_p13 = scmp.ne.s32.totalorder %s135_s1, %s84_s22  ;;  %p88_p0 = scmp.lt.u32.totalorder %s84_s22, %s135_s1 }
  0x25   :  { %p90_p1 = pnand %p88_p0, %p85_p13 }
  0x27   :  { %93 = shalt.err (!%p90_p1)
}
  0x28   :  { %42 = dma.vmem_to_hbm [thread:$0]  %s40_s19, 32, %s135_s1, [#allocation4]  }
  0x29   :  { %96 = dma.done.wait [#allocation4], 32  }
  0x2a   :  { %97 = vsyncadd [#allocation4], 4294967264 }
  0x2b   :  { %46 = vsyncpa [#allocation3], 1 }
  0x2c   :  { %47 = vsyncpa [#allocation4], 1 }

</bundles_post_ra>
